<compile_context>
chip_gen: v6e
topology: v6e:2x2x1
jax: 0.10.0
libtpu: 0.0.40
codegen_flags: <defaults>
</compile_context>

<pallas_src>
import functools

import jax
import jax.numpy as jnp
from jax.experimental import pallas as pl
from jax.experimental.pallas import tpu as pltpu


def distmult_kernel(h_ref, r_ref, e_ref, b_ref, *rest,
                    apply_sigmoid, compute_dtype):
    # Optional per-entity-row dequant scale tile precedes the output ref.
    if len(rest) == 2:
        s_ref, o_ref = rest
    else:
        (o_ref,) = rest
        s_ref = None

    # t = relu(h * r): tiny (B, D) elementwise VPU work, recomputed each step
    # (see megacore note in the header); hidden under the E-tile DMA.
    t = jnp.maximum(h_ref[...] * r_ref[...], 0.0).astype(compute_dtype)

    # E tile as streamed from HBM (f32 / bf16 / fp8 / int8). Any in-vreg cast
    # (e.g. int8 -> bf16 dequant) costs VPU slots only, never HBM traffic.
    e = e_ref[...]
    if e.dtype != compute_dtype:
        e = e.astype(compute_dtype)

    # Scores for this entity tile: (B, D) x (tn, D)^T -> (B, tn) on the MXU,
    # contracting on D so E never needs to be transposed in HBM.
    x = jax.lax.dot_general(
        t, e,
        dimension_numbers=(((1,), (1,)), ((), ())),
        preferred_element_type=jnp.float32)

    if s_ref is not None:
        x = x * s_ref[...]            # column-wise per-entity-row dequant scale

    x = x + b_ref[...]                # broadcast (1, tn) bias over batch
    if apply_sigmoid:
        x = jax.nn.sigmoid(x)
    o_ref[...] = x.astype(o_ref.dtype)


def _default_vmem_limit_bytes():
    """~75% of physical VMEM, capped at 96 MiB (48 MiB fallback, v7x-safe)."""
    try:
        phys = int(pltpu.get_tpu_info().vmem_capacity_bytes)
    except Exception:
        phys = 64 * 1024 * 1024
    return min(phys * 3 // 4, 96 * 1024 * 1024)


def _choose_entity_tile(B, D, N, e_bytes, scale_bytes, out_bytes, budget_bytes):
    """Largest multiple-of-256 entity tile fitting the VMEM budget, with a
    mild preference for an even grid-step count >= 2 (v7x: 2 TensorCores)."""
    # Per-entity-column bytes: double-buffered E row + bias + scale + output
    # column, plus one copy of the f32 (B, tn) intermediate from bias/sigmoid.
    per_col = 2 * (D * e_bytes + 4 + scale_bytes + B * out_bytes) + B * 4
    fixed = 2 * 2 * B * D * 4            # h, r resident blocks, double-buffered
    avail = budget_bytes - fixed
    if avail <= per_col * 256:
        return 256
    tn = (avail // per_col) // 256 * 256
    tn = min(tn, pl.cdiv(N, 256) * 256)  # never larger than the rounded table
    # Prefer an even number of grid steps >= 2 so both v7x cores get work, but
    # only if that does not shrink the tile below half of the VMEM-optimal size.
    steps = pl.cdiv(N, tn)
    if steps % 2 == 1:
        tn_even = max(256, pl.cdiv(pl.cdiv(N, steps + 1), 256) * 256)
        if 2 * tn_even >= tn:
            tn = tn_even
    return tn


def quantize_entity_table_int8(e_weight):
    """Init-time (one-off) per-row symmetric int8 quantization of E.
    Returns (E_int8 (N, D), scales (1, N) f32)."""
    amax = jnp.max(jnp.abs(e_weight), axis=1, keepdims=True)
    scale = jnp.maximum(amax, 1e-12) / 127.0
    e_q = jnp.clip(jnp.round(e_weight / scale), -127, 127).astype(jnp.int8)
    return e_q, scale.reshape(1, -1).astype(jnp.float32)


def distmult_forward(h, r, e_weight, b, *, e_scale=None, tn=None,
                     apply_sigmoid=True, out_dtype=jnp.float32,
                     vmem_limit_bytes=None):
    """h, r: (B, D) f32; e_weight: (N, D) in f32/bf16/fp8/int8 (cast/quantized
    ONCE at model init -- never per call); b: (N,); e_scale: optional (1, N)
    f32 per-row dequant scales (required for int8 E). Returns (B, N) out_dtype.

    Raising B (>=128) is the main lever to move off the HBM-bandwidth wall;
    in that regime prefer apply_sigmoid=False and/or out_dtype=bf16.
    """
    B, D = h.shape
    N, D2 = e_weight.shape
    assert D == D2, "embedding dims of queries and entity table must match"
    if e_scale is not None:
        assert e_scale.shape == (1, N)

    e_bytes = jnp.dtype(e_weight.dtype).itemsize
    out_bytes = jnp.dtype(out_dtype).itemsize
    compute_dtype = jnp.float32 if e_weight.dtype == jnp.float32 else jnp.bfloat16

    if vmem_limit_bytes is None:
        vmem_limit_bytes = _default_vmem_limit_bytes()
    if tn is None:
        tn = _choose_entity_tile(
            B, D, N, e_bytes, 4 if e_scale is not None else 0, out_bytes,
            int(vmem_limit_bytes) * 3 // 4)   # size tiles at 75% of the limit

    b2d = b.reshape(1, N).astype(jnp.float32)

    in_specs = [
        pl.BlockSpec((B, D), lambda j: (0, 0)),    # h (resident)
        pl.BlockSpec((B, D), lambda j: (0, 0)),    # r (resident)
        pl.BlockSpec((tn, D), lambda j: (j, 0)),   # E tile (streamed)
        pl.BlockSpec((1, tn), lambda j: (0, j)),   # bias tile
    ]
    args = [h, r, e_weight, b2d]
    if e_scale is not None:
        in_specs.append(pl.BlockSpec((1, tn), lambda j: (0, j)))  # scale tile
        args.append(e_scale.astype(jnp.float32))

    out = pl.pallas_call(
        functools.partial(distmult_kernel, apply_sigmoid=apply_sigmoid,
                          compute_dtype=compute_dtype),
        out_shape=jax.ShapeDtypeStruct((B, N), out_dtype),
        grid_spec=pltpu.PrefetchScalarGridSpec(
            num_scalar_prefetch=0,
            grid=(pl.cdiv(N, tn),),                # partial last tile is masked
            in_specs=in_specs,
            out_specs=pl.BlockSpec((B, tn), lambda j: (0, j)),
        ),
        compiler_params=pltpu.CompilerParams(
            dimension_semantics=("parallel",),
            vmem_limit_bytes=int(vmem_limit_bytes)),
    )(*args)
    return out


if __name__ == "__main__":
    # Small, deterministic synthetic setup. num_entities is deliberately NOT a
    # multiple of the tile size to exercise the partial-final-tile path.
    num_entities = 1000
    num_relations = 16
    embedding_dim = 128
    batch = 8

    key = jax.random.PRNGKey(0)
    k_e, k_r, k_hi, k_ri = jax.random.split(key, 4)

    # Xavier-normal-style init, row 0 zeroed to mimic padding_idx=0.
    std_e = (2.0 / (num_entities + embedding_dim)) ** 0.5
    std_r = (2.0 / (num_relations + embedding_dim)) ** 0.5
    E = jax.random.normal(k_e, (num_entities, embedding_dim), jnp.float32) * std_e
    R = jax.random.normal(k_r, (num_relations, embedding_dim), jnp.float32) * std_r
    E = E.at[0].set(0.0)
    R = R.at[0].set(0.0)
    b = jnp.zeros((num_entities,), jnp.float32)

    # Init-time cached variants of the entity table (built ONCE, not per call).
    E_bf16 = E.astype(jnp.bfloat16)
    E_int8, E_scale = quantize_entity_table_int8(E)

    h_idx = jax.random.randint(k_hi, (batch,), 0, num_entities)
    r_idx = jax.random.randint(k_ri, (batch,), 0, num_relations)

    # Embedding lookups (glue, plain JAX).
    h = E[h_idx]   # (B, D)
    r = R[r_idx]   # (B, D)

    # Reference pieces.
    t_f32 = jnp.maximum(h * r, 0.0)
    t_bf = t_f32.astype(jnp.bfloat16).astype(jnp.float32)

    # --- f32 path: tight check against the pure-JAX reference. ---
    out_f32 = jax.block_until_ready(distmult_forward(h, r, E, b))
    ref_f32 = jax.nn.sigmoid(t_f32 @ E.T + b[None, :])
    assert out_f32.shape == (batch, num_entities)
    assert jnp.allclose(out_f32, ref_f32, atol=1e-5, rtol=1e-5)

    # --- bf16-streamed E (cached at init), bf16 output: looser check. ---
    out_bf = jax.block_until_ready(
        distmult_forward(h, r, E_bf16, b, out_dtype=jnp.bfloat16))
    ref_bf = jax.nn.sigmoid(t_bf @ E_bf16.astype(jnp.float32).T + b[None, :])
    assert out_bf.shape == (batch, num_entities)
    assert out_bf.dtype == jnp.bfloat16
    assert jnp.allclose(out_bf.astype(jnp.float32), ref_bf, atol=2e-2, rtol=2e-2)

    # --- int8-streamed E with per-row dequant scales (cached at init). ---
    out_i8 = jax.block_until_ready(
        distmult_forward(h, r, E_int8, b, e_scale=E_scale))
    ref_i8 = jax.nn.sigmoid(
        (t_bf @ E_int8.astype(jnp.float32).T) * E_scale + b[None, :])
    assert out_i8.shape == (batch, num_entities)
    assert jnp.allclose(out_i8, ref_i8, atol=5e-3, rtol=5e-3)

    print("KERNEL_OK")
</pallas_src>

<mosaic_0001>
module attributes {stable_mosaic.version = 11 : i64} {
  func.func @distmult_kernel(%arg0: i32, %arg1: memref<8x128xf32, #tpu.memory_space<vmem>>, %arg2: memref<8x128xf32, #tpu.memory_space<vmem>>, %arg3: memref<512x128xf32, #tpu.memory_space<vmem>>, %arg4: memref<1x512xf32, #tpu.memory_space<vmem>>, %arg5: memref<8x512xf32, #tpu.memory_space<vmem>>) attributes {dimension_semantics = [#tpu.dimension_semantics<parallel>], iteration_bounds = array<i64: 2>, scalar_prefetch = 0 : i64, scratch_operands = 0 : i64, tpu.core_type = #tpu.core_type<tc>, window_params = [{pipeline_mode = #tpu.pipeline_mode<synchronous>, transform_indices = @transform_0, window_bounds = array<i64: 8, 128>}, {pipeline_mode = #tpu.pipeline_mode<synchronous>, transform_indices = @transform_1, window_bounds = array<i64: 8, 128>}, {transform_indices = @transform_2, window_bounds = array<i64: 512, 128>}, {transform_indices = @transform_3, window_bounds = array<i64: 1, 512>}, {transform_indices = @transform_4, window_bounds = array<i64: 8, 512>}]} {
    %c0 = arith.constant 0 : index
    %c0_0 = arith.constant 0 : index
    %0 = vector.load %arg1[%c0, %c0_0] : memref<8x128xf32, #tpu.memory_space<vmem>>, vector<8x128xf32>
    %c0_1 = arith.constant 0 : index
    %c0_2 = arith.constant 0 : index
    %1 = vector.load %arg2[%c0_1, %c0_2] : memref<8x128xf32, #tpu.memory_space<vmem>>, vector<8x128xf32>
    %2 = arith.mulf %0, %1 : vector<8x128xf32>
    %cst = arith.constant 0.000000e+00 : f32
    %3 = vector.broadcast %cst : f32 to vector<8x128xf32>
    %4 = arith.maximumf %2, %3 : vector<8x128xf32>
    %c0_3 = arith.constant 0 : index
    %c0_4 = arith.constant 0 : index
    %5 = vector.load %arg3[%c0_3, %c0_4] : memref<512x128xf32, #tpu.memory_space<vmem>>, vector<512x128xf32>
    %cst_5 = arith.constant dense<0.000000e+00> : vector<8x512xf32>
    %6 = tpu.matmul %4, %5, %cst_5 {dimension_numbers = #tpu.dot_dimension_numbers<[1], [1], [0], [0], [0, 0, 1, 0], [], []>} : vector<8x128xf32>, vector<512x128xf32>, vector<8x512xf32> -> vector<8x512xf32>
    %c0_6 = arith.constant 0 : index
    %c0_7 = arith.constant 0 : index
    %7 = vector.load %arg4[%c0_6, %c0_7] : memref<1x512xf32, #tpu.memory_space<vmem>>, vector<1x512xf32>
    %8 = vector.broadcast %7 : vector<1x512xf32> to vector<8x512xf32>
    %9 = arith.addf %6, %8 : vector<8x512xf32>
    %10 = arith.negf %9 : vector<8x512xf32>
    %11 = math.exp %10 : vector<8x512xf32>
    %cst_8 = arith.constant 1.000000e+00 : f32
    %12 = vector.broadcast %cst_8 : f32 to vector<8x512xf32>
    %13 = arith.addf %12, %11 : vector<8x512xf32>
    %14 = arith.divf %12, %13 : vector<8x512xf32>
    %c0_9 = arith.constant 0 : index
    %c0_10 = arith.constant 0 : index
    %15 = vector.load %arg5[%c0_9, %c0_10] : memref<8x512xf32, #tpu.memory_space<vmem>>, vector<8x512xf32>
    tpu.vector_store %arg5[%c0_9, %c0_10], %14 {strides = array<i32>} : memref<8x512xf32, #tpu.memory_space<vmem>>, vector<8x512xf32>,
    return
  }
  func.func @transform_0(%arg0: i32) -> (i32, i32) {
    %c0_i32 = arith.constant 0 : i32
    %c0_i32_0 = arith.constant 0 : i32
    %c0_i32_1 = arith.constant 0 : i32
    return %c0_i32, %c0_i32_0 : i32, i32
  }
  func.func @transform_1(%arg0: i32) -> (i32, i32) {
    %c0_i32 = arith.constant 0 : i32
    %c0_i32_0 = arith.constant 0 : i32
    %c0_i32_1 = arith.constant 0 : i32
    return %c0_i32, %c0_i32_0 : i32, i32
  }
  func.func @transform_2(%arg0: i32) -> (i32, i32) {
    %c0_i32 = arith.constant 0 : i32
    %c0_i32_0 = arith.constant 0 : i32
    return %arg0, %c0_i32 : i32, i32
  }
  func.func @transform_3(%arg0: i32) -> (i32, i32) {
    %c0_i32 = arith.constant 0 : i32
    %c0_i32_0 = arith.constant 0 : i32
    return %c0_i32, %arg0 : i32, i32
  }
  func.func @transform_4(%arg0: i32) -> (i32, i32) {
    %c0_i32 = arith.constant 0 : i32
    %c0_i32_0 = arith.constant 0 : i32
    return %c0_i32, %arg0 : i32, i32
  }
}

</mosaic_0001>

<bundles_post_ra>
// kernel: tpu_custom_call.1
= control target key start
LH: loop header
LB: loop body
LE: loop exit
PB: predicated region body
PF: predicated region fallthrough
CT: control target
= control target key end

     0   :  { %s1364_s0 = inlined_call_operand.hbm [shape: f32[8,128], index: 0, kind: input, shape index: {}]   ;;  %s1365_s1 = inlined_call_operand.hbm [shape: f32[8,128], index: 1, kind: input, shape index: {}]   ;;  %s1366_s2 = inlined_call_operand.hbm [shape: f32[1000,128], index: 2, kind: input, shape index: {}]   ;;  %s1367_s3 = inlined_call_operand.hbm [shape: f32[1,1000], index: 3, kind: input, shape index: {}]   ;;  %s1368_s4 = inlined_call_operand.hbm [shape: f32[8,1000], index: 4, kind: output, shape index: {}]  }
   0x1   :  { %1374 = sst [smem:[#allocation14_spill]] %s1364_s0 }
   0x2   :  { %9 = vsyncpa [#allocation3], 0 }
   0x3   :  { %10 = vsyncpa [#allocation6], 0 }
   0x4   :  { %11 = vsyncpa [#allocation4], 0 }
   0x5   :  { %13 = vsyncpa [#allocation4 + $0x1], 0  ;;  %s1063_s15 = smov 0   ;;  %s1065_s16 = smov 0  }
   0x6   :  { %s1067_s17 = smov 0   ;;  %s1069_s18 = smov 0  }
   0x7 LB: > { %s1084_s19 = sadd.s32 4294967295, %s1029_s18   ;;  %s671_s20 = sadd.s32 4294967294, %s1029_s18   ;;  %s1029_s18 = sphi %s1069_s18, %s1395_s18   ;;  %s1025_s17 = sphi %s1067_s17, %s1394_s17   ;;  %s1021_s16 = sphi %s1065_s16, %s1393_s16   ;;  %s1017_s15 = sphi %s1063_s15, %s1392_s15  }
   0x8   : > { %s1088_s21 = sadd.s32 1, %s1029_s18   ;;  %s68_s22 = sadd.s32 1, %s1025_s17 }
   0x9   : > { %s65_s23 = ssub.s32 %s1029_s18, %s1088_s21  ;;  %p75_p0 = scmp.ne.s32.totalorder %s1025_s17, %s1021_s16 }
   0xa   : > { %p66_p1 = scmp.eq.s32.totalorder %s65_s23, 0  ;;  %p76_p2 = scmp.eq.s32.totalorder %s1029_s18, 0 }
   0xb   : > { %p81_p3 = scmp.ne.s32.totalorder %s1021_s16, %s1017_s15  ;;  %p1370_p4 = scmp.eq.s32.totalorder %s1084_s19, 0 }
   0xc   : > { %s1100_s24 = scalar_select %p66_p1, %s1025_s17, %s68_s22  }
   0xd   : > { %p1102_p5 = por %p76_p2, %p75_p0  ;;  %p1108_p6 = por %p1370_p4, %p81_p3 }
   0xe   : > { %p131_p7 = scmp.eq.s32.totalorder %s1084_s19, 1  ;;  %p137_p8 = scmp.eq.s32.totalorder %s671_s20, 1 }
   0xf   : > { %s1375_s25 = scalar_select %p1102_p5, 1, 0 }
  0x10   : > { %s1376_s26 = scalar_select %p1108_p6, 1, 0 }
  0x11   : > { %p672_p9 = scmp.ge.s32.totalorder %s1029_s18, 1  ;;  %p144_p10 = scmp.lt.s32.totalorder %s1029_s18, 3 }
  0x12   : > { %p1115_p11 = por %p131_p7, %p75_p0  ;;  %p1119_p12 = por %p137_p8, %p81_p3 }
  0x13   : > { %p1123_p13 = pnand %p672_p9, %p144_p10  ;;  %s1031_s30 = smov [#allocation2]  }
  0x14   : > { %s1377_s27 = scalar_select %p1115_p11, 1, 0 }
  0x15   : > { %s1378_s28 = scalar_select %p1119_p12, 1, 0 }
  0x16   : > { %s1379_s29 = scalar_select %p1123_p13, 1, 0 }
  0x17   : > { %p785_p1 = pneg %p1123_p13  ;;  %s157_s5 = sshll.u32 %s1031_s30, 4  ;;  %s158_s5 = int_to_ptr.vmem [resolvable:$true] %s157_s5 }
  0x18   : > { %s1032_s6 = smov [#allocation5]   ;;  %s864_s9 = scalar_lea.vmem %s158_s5, 128 }
  0x19   : > { %s168_s7 = sshll.u32 %s1032_s6, 4  ;;  %p1131_p0 = pnand %p785_p1, %p1370_p4  ;;  %s169_s7 = int_to_ptr.vmem [resolvable:$true] %s168_s7 }
  0x1a   : > { %p865_p3 = scmp.ne.s32.totalorder %s158_s5, %s864_s9  ;;  %p872_p9 = scmp.lt.s32.totalorder %s158_s5, %s158_s5 }
  0x1b   : > { %p855_p2 = pneg %p1131_p0  ;;  %p873_p10 = scmp.lt.s32.totalorder %s864_s9, %s864_s9 }
  0x1d   : > { %p867_p7 = pnand %p865_p3, %p855_p2  ;;  %p874_p12 = por %p873_p10, %p872_p9 }
  0x1f   : > { %p868_p8 = pneg %p867_p7 }
  0x21   : > { %p875_p11 = pnand %p874_p12, %p868_p8 }
  0x23   : > { %878 = shalt.err (!%p875_p11)
}
  0x24   : > { %s1381_s0 = sld [smem:[#allocation14_spill]]  ;;  %s890_s12 = scalar_lea.vmem %s169_s7, 128 }
  0x25   : > { %p891_p1 = scmp.ne.s32.totalorder %s169_s7, %s890_s12  ;;  %p898_p3 = scmp.lt.s32.totalorder %s169_s7, %s169_s7 }
  0x26   : > { %p899_p7 = scmp.lt.s32.totalorder %s890_s12, %s890_s12 }
  0x27   : > { %p893_p4 = pnand %p891_p1, %p855_p2 }
  0x28   : > { %p900_p13 = por %p899_p7, %p898_p3 }
  0x29   : > { %p894_p6 = pneg %p893_p4 }
  0x2a   : > { %788 = dma.hbm_to_vmem [thread:$0]  (!%p1131_p0), %s1381_s0, 128, %s158_s5, [#allocation3]  }
  0x2b   : > { %p901_p5 = pnand %p900_p13, %p894_p6 }
  0x2d   : > { %904 = shalt.err (!%p901_p5)
}
  0x2e   : > { %791 = dma.hbm_to_vmem [thread:$0]  (!%p1131_p0), %s1365_s1, 128, %s169_s7, [#allocation6]  }
  0x2f   : > { %p675_p11 = scmp.ge.s32.totalorder %s1029_s18, 2 }
  0x30   : > { %p1382_p12 = scmp.ne.s32.totalorder (!%p675_p11), %s1375_s25, 0 }
  0x31   : > { %175 = sbr.rel (%p675_p11) target bundleno = 111 (0x6f), region = 24 }
  0x36   : > { %178 = sbr.rel (!%p1382_p12) target bundleno = 86 (0x56), region = 28  ;;  %s179_s20 = sand.u32 (%p1382_p12), 1, %s1029_s18  }
  0x37   : > { %s181_s22 = sand.u32 (%p1382_p12), 1, %s1025_s17   ;;  %s677_s30 = sshll.u32 (%p1382_p12), %s1029_s18, 6 }
  0x38   : > { %s676_s23 = sshll.u32 (%p1382_p12), %s181_s22, 9  ;;  %s185_s5 = ssub.s32 (%p1382_p12), 125, %s677_s30 }
  0x39   : > { %p186_p4 = scmp.lt.s32.totalorder (%p1382_p12), %s185_s5, 64  ;;  %s1164_s8 = scalar_lea.sflag (%p1382_p12), [#allocation3], %s179_s20 }
  0x3a   : > { %s183_s9 = scalar_lea.vmem (%p1382_p12), [#allocation7], %s676_s23 }
  0x3b   : > { %s1397_s5 = smov (!%p186_p4, %s185_s5), 64 }
  0x3c   : > { %s1161_s6 = sshll.u32 %s1397_s5, 7 }
  0x3d   : > { %s190_s7 = ssub.s32 8192, %s1161_s6 }
  0x3e   : > { %191 = vsyncadd %s1164_s8, %s190_s7  ;;  %p679_p5 = scmp.ne.s32.totalorder %s1161_s6, 0  ;;  %s701_s10 = sshll.u32 %s1029_s18, 13 }
  0x3f   : > { %s1172_s13 = scalar_lea.hbm %s1366_s2, %s701_s10  ;;  %s196_s14 = sshll.u32 %s183_s9, 4  ;;  %s1174_s14 = int_to_ptr.vmem [resolvable:$true] %s196_s14 }
  0x40   : > { %s905_s20 = scalar_lea.hbm %s1172_s13, %s1161_s6  ;;  %s909_s30 = scalar_lea.hbm %s1366_s2, 16000 }
  0x41   : > { %p906_p6 = scmp.ne.s32.totalorder %s1172_s13, %s905_s20  ;;  %p910_p2 = scmp.lt.s32.totalorder %s1172_s13, %s1366_s2 }
  0x42   : > { %p911_p8 = scmp.lt.s32.totalorder %s909_s30, %s905_s20 }
  0x43   : > { %p907_p13 = pnand %p906_p6, %p679_p5 }
  0x44   : > { %p912_p9 = por %p911_p8, %p910_p2 }
  0x45   : > { %p908_p0 = pneg %p907_p13 }
  0x47   : > { %p913_p10 = pnand %p912_p9, %p908_p0 }
  0x49   : > { %916 = shalt.err (!%p913_p10)
}
  0x4a   : > { %s917_s9 = scalar_lea.vmem %s1174_s14, %s1161_s6  ;;  %s1033_s10 = smov [#allocation7]  }
  0x4b   : > { %p918_p1 = scmp.ne.s32.totalorder %s1174_s14, %s917_s9  ;;  %s921_s11 = sshll.u32 %s1033_s10, 4  ;;  %s922_s11 = int_to_ptr.vmem [resolvable:$false] %s921_s11 }
  0x4c   : > { %s923_s12 = scalar_lea.vmem %s922_s11, 16384  ;;  %p924_p12 = scmp.lt.s32.totalorder %s1174_s14, %s922_s11 }
  0x4d   : > { %p919_p3 = pnand %p918_p1, %p679_p5  ;;  %p925_p4 = scmp.lt.s32.totalorder %s923_s12, %s917_s9 }
  0x4f   : > { %p920_p7 = pneg %p919_p3  ;;  %p926_p6 = por %p925_p4, %p924_p12 }
  0x51   : > { %p927_p13 = pnand %p926_p6, %p920_p7 }
  0x53   : > { %930 = shalt.err (!%p927_p13)
}
  0x54   : > { %s1034_s20 = smov 128   ;;  %s1035_s22 = smov 8  }
  0x55   : > { %202 = dma.hbm_to_vmem [thread:$0]  (%p679_p5), %s1172_s13, %s1161_s6, %s1174_s14, %s1164_s8, %s1034_s20, %s1034_s20, %s1035_s22  }
  0x56 PF: > { %s206_s23 = sand.u32 1, %s1029_s18   ;;  %s208_s30 = sand.u32 1, %s1025_s17  }
  0x57   : > { %s683_s5 = sshll.u32 %s208_s30, 2  ;;  %s702_s7 = sshll.u32 %s1029_s18, 6 }
  0x58   : > { %s1206_s11 = scalar_lea.hbm %s1367_s3, %s702_s7  ;;  %s210_s12 = scalar_lea.vmem [#allocation8], %s683_s5 }
  0x59   : > { %s218_s0 = sshll.u32 %s210_s12, 4  ;;  %s207_s6 = scalar_lea.sflag [#allocation3], %s206_s23  ;;  %s219_s0 = int_to_ptr.vmem [resolvable:$true] %s218_s0 }
  0x5a   : > { %s931_s8 = scalar_lea.hbm %s1206_s11, 64  ;;  %p1383_p0 = scmp.ne.s32.totalorder %s1375_s25, 0 }
  0x5b   : > { %p932_p5 = scmp.ne.s32.totalorder %s1206_s11, %s931_s8  ;;  %s935_s20 = scalar_lea.hbm %s1367_s3, 128 }
  0x5c   : > { %p936_p9 = scmp.lt.s32.totalorder %s1206_s11, %s1367_s3  ;;  %p937_p10 = scmp.lt.s32.totalorder %s935_s20, %s931_s8 }
  0x5d   : > { %p933_p2 = pnand %p932_p5, %p1383_p0 }
  0x5e   : > { %p938_p1 = por %p937_p10, %p936_p9 }
  0x5f   : > { %p934_p8 = pneg %p933_p2 }
  0x61   : > { %p939_p3 = pnand %p938_p1, %p934_p8 }
  0x63   : > { %942 = shalt.err (!%p939_p3)
}
  0x64   : > { %s943_s5 = scalar_lea.vmem %s219_s0, 64  ;;  %s1036_s23 = smov [#allocation8]  }
  0x65   : > { %p944_p7 = scmp.ne.s32.totalorder %s219_s0, %s943_s5  ;;  %s947_s7 = sshll.u32 %s1036_s23, 4  ;;  %s948_s7 = int_to_ptr.vmem [resolvable:$false] %s947_s7 }
  0x66   : > { %s949_s9 = scalar_lea.vmem %s948_s7, 128  ;;  %p950_p6 = scmp.lt.s32.totalorder %s219_s0, %s948_s7 }
  0x67   : > { %p945_p12 = pnand %p944_p7, %p1383_p0  ;;  %p951_p13 = scmp.lt.s32.totalorder %s949_s9, %s943_s5 }
  0x69   : > { %p946_p4 = pneg %p945_p12  ;;  %p952_p5 = por %p951_p13, %p950_p6 }
  0x6b   : > { %p953_p2 = pnand %p952_p5, %p946_p4 }
  0x6d   : > { %956 = shalt.err (!%p953_p2)
}
  0x6e   : > { %776 = dma.hbm_to_vmem [thread:$0]  (%p1383_p0), %s1206_s11, 64, %s219_s0, %s207_s6  }
  0x6f PF: > { %p1384_p8 = scmp.ne.s32.totalorder %s1379_s29, 0 }
  0x70   : > { %p1385_p9 = scmp.eq.s32.totalorder (!%p1384_p8), %s1084_s19, 0 }
  0x71   : > { %227 = sbr.rel (%p1384_p8) target bundleno = 436 (0x1b4), region = 36 }
  0x76   : > { %1000 = dma.done.wait (%p1385_p9), [#allocation3], 128   ;;  %p1386_p10 = pmov %p1385_p9 }
  0x77   : > { %p1387_p1 = pmov %p1385_p9 }
  0x78   : > { %1002 = vsyncadd (%p1386_p10), [#allocation3], 4294967168 }
  0x79   : > { %1004 = dma.done.wait (%p1387_p1), [#allocation6], 128   ;;  %p1388_p3 = pmov %p1387_p1 }
  0x7a   : > { %s237_s0 = sand.u32 1, %s1084_s19   ;;  %s1236_s25 = sand.u32 1, %s1021_s16  }
  0x7b   : > { %1006 = vsyncadd (%p1388_p3), [#allocation6], 4294967168  ;;  %s689_s29 = sshll.u32 %s1236_s25, 9  ;;  %s238_s10 = scalar_lea.sflag [#allocation3], %s237_s0 }
  0x7c   : > { %s1239_s11 = scalar_lea.vmem [#allocation7], %s689_s29  ;;  %p1389_p0 = scmp.ne.s32.totalorder %s1376_s26, 0 }
  0x7e   : > { %1008 = dma.done.wait (%p1389_p0), %s238_s10, 8256  }
  0x7f   : > { %1010 = vsyncadd (%p1389_p0), %s238_s10, 4294959040  ;;  %v322_v0 = vld [vmem:[%s1239_s11 + $0xf8] sm:$0xff]  ;;  %v321_v4 = vld [vmem:[%s1239_s11 + $0xf0] sm:$0xff]  ;;  %s690_s26 = sshll.u32 %s1236_s25, 2  ;;  %s691_s6 = sshll.u32 %s1236_s25, 5 }
  0x80   : > { %v354_v1 = vld [vmem:[%s1239_s11 + $0x1f8] sm:$0xff]  ;;  %704 = vmatprep.subr.mxu0 %v322_v0  ;;  %v353_v5 = vld [vmem:[%s1239_s11 + $0x1f0] sm:$0xff]  ;;  %v320_v8 = vld [vmem:[%s1239_s11 + $0xe8] sm:$0xff]  ;;  %s250_s12 = scalar_lea.vmem [#allocation8], %s690_s26  ;;  %s703_s8 = sshll.u32 %s1084_s19, 9 }
  0x81   : > { %v306_v2 = vld [vmem:[%s1239_s11 + $0x78] sm:$0xff]  ;;  %738 = vmatprep.subr.mxu1 %v354_v1  ;;  %v305_v6 = vld [vmem:[%s1239_s11 + $0x70] sm:$0xff]  ;;  %v352_v9 = vld [vmem:[%s1239_s11 + $0x1e8] sm:$0xff]  ;;  %s279_s13 = scalar_lea.vmem [#allocation9], %s691_s6  ;;  %s1321_s30 = scalar_lea.hbm %s1368_s4, %s703_s8 }
  0x82   : > { %v338_v3 = vld [vmem:[%s1239_s11 + $0x178] sm:$0xff]  ;;  %705 = vmatpush3.xpose.msra.mxu0 %v306_v2  ;;  %v337_v7 = vld [vmem:[%s1239_s11 + $0x170] sm:$0xff]  ;;  %v304_v10 = vld [vmem:[%s1239_s11 + $0x68] sm:$0xff]  ;;  %s562_s14 = sshll.u32 %s279_s13, 4  ;;  %s548_s19 = scalar_lea.sflag [#allocation4], %s1236_s25  ;;  %s1323_s14 = int_to_ptr.vmem [resolvable:$true] %s562_s14 }
  0x83   : > { %739 = vmatpush3.xpose.msra.mxu1 %v338_v3  ;;  %706 = vmatprep.subr.mxu0 %v321_v4  ;;  %v336_v11 = vld [vmem:[%s1239_s11 + $0x168] sm:$0xff]  ;;  %v319_v12 = vld [vmem:[%s1239_s11 + $0xe0] sm:$0xff]  ;;  %v318_v16 = vld [vmem:[%s1239_s11 + $0xd8] sm:$0xff]  ;;  %v357_v4 = vlaneseq  ;;  %s957_s5 = scalar_lea.vmem %s1323_s14, 512  ;;  %p1390_p12 = scmp.ne.s32.totalorder %s1377_s27, 0 }
  0x84   : > { %740 = vmatprep.subr.mxu1 %v353_v5  ;;  %v351_v13 = vld [vmem:[%s1239_s11 + $0x1e0] sm:$0xff]  ;;  %v350_v17 = vld [vmem:[%s1239_s11 + $0x1d8] sm:$0xff]  ;;  %v317_v20 = vld [vmem:[%s1239_s11 + $0xd0] sm:$0xff]  ;;  %p958_p7 = scmp.ne.s32.totalorder %s1323_s14, %s957_s5  ;;  %s1037_s23 = smov [#allocation9]  }
  0x85   : > { %v303_v14 = vld [vmem:[%s1239_s11 + $0x60] sm:$0xff]  ;;  %v302_v18 = vld [vmem:[%s1239_s11 + $0x58] sm:$0xff]  ;;  %v349_v21 = vld [vmem:[%s1239_s11 + $0x1d0] sm:$0xff]  ;;  %v358_v5 = vshrl.u32 %v357_v4, 7  ;;  %s961_s7 = sshll.u32 %s1037_s23, 4  ;;  %s962_s7 = int_to_ptr.vmem [resolvable:$false] %s961_s7 }
  0x86   : > { %707 = vmatpush3.xpose.msra.mxu0 %v305_v6  ;;  %v335_v15 = vld [vmem:[%s1239_s11 + $0x160] sm:$0xff]  ;;  %v334_v19 = vld [vmem:[%s1239_s11 + $0x158] sm:$0xff]  ;;  %v301_v22 = vld [vmem:[%s1239_s11 + $0x50] sm:$0xff]  ;;  %p959_p4 = pnand %p958_p7, %p1390_p12  ;;  %s963_s9 = scalar_lea.vmem %s962_s7, 1024 }
  0x87   : > { %741 = vmatpush3.xpose.msra.mxu1 %v337_v7  ;;  %708 = vmatprep.subr.mxu0 %v320_v8  ;;  %v333_v23 = vld [vmem:[%s1239_s11 + $0x150] sm:$0xff]  ;;  %v316_v24 = vld [vmem:[%s1239_s11 + $0xc8] sm:$0xff]  ;;  %v288_v27 = vld [vmem:[#allocation5] sm:$0xff]  ;;  %v359_v6 = vsub.s32 0, %v358_v5  ;;  %v367_v7 = vsub.s32 2, %v358_v5  ;;  %p964_p13 = scmp.lt.s32.totalorder %s1323_s14, %s962_s7  ;;  %p965_p5 = scmp.lt.s32.totalorder %s963_s9, %s957_s5 }
  0x88   : > { %742 = vmatprep.subr.mxu1 %v352_v9  ;;  %v348_v25 = vld [vmem:[%s1239_s11 + $0x1c8] sm:$0xff]  ;;  %v287_v26 = vld [vmem:[#allocation2] sm:$0xff]  ;;  %v315_v31 = vld [vmem:[%s1239_s11 + $0xc0] sm:$0xff]  ;;  %v363_v9 = vsub.s32 1, %v358_v5  ;;  %p960_p6 = pneg %p959_p4 }
  0x89   : > { %v289_v28 = vmul.f32 %v288_v27, %v287_v26  ;;  %v300_v29 = vld [vmem:[%s1239_s11 + $0x48] sm:$0xff]  ;;  %v347_v32 = vld [vmem:[%s1239_s11 + $0x1c0] sm:$0xff]  ;;  %v314_v36 = vld [vmem:[%s1239_s11 + $0xb8] sm:$0xff]  ;;  %p966_p2 = por %p965_p5, %p964_p13 }
  0x8a   : > { %709 = vmatpush3.xpose.msra.mxu0 %v304_v10  ;;  %v332_v30 = vld [vmem:[%s1239_s11 + $0x148] sm:$0xff]  ;;  %v299_v34 = vld [vmem:[%s1239_s11 + $0x40] sm:$0xff]  ;;  %v346_v37 = vld [vmem:[%s1239_s11 + $0x1b8] sm:$0xff]  ;;  %v371_v10 = vsub.s32 3, %v358_v5 }
  0x8b   : > { %743 = vmatpush3.xpose.msra.mxu1 %v336_v11  ;;  %710 = vmatprep.subr.mxu0 %v319_v12  ;;  %v1275_v33 = vmax.f32 %v289_v28, 0.0  ;;  %v331_v35 = vld [vmem:[%s1239_s11 + $0x140] sm:$0xff]  ;;  %v298_v38 = vld [vmem:[%s1239_s11 + $0x38] sm:$0xff]  ;;  %v313_v40 = vld [vmem:[%s1239_s11 + $0xb0] sm:$0xff]  ;;  %p967_p8 = pnand %p966_p2, %p960_p6 }
  0x8c   : > { %744 = vmatprep.subr.mxu1 %v351_v13  ;;  %v330_v39 = vld [vmem:[%s1239_s11 + $0x138] sm:$0xff]  ;;  %v345_v41 = vld [vmem:[%s1239_s11 + $0x1b0] sm:$0xff]  ;;  %v312_v44 = vld [vmem:[%s1239_s11 + $0xa8] sm:$0xff] }
  0x8d   : > { %736 = vmatprep.mubr.f32.mxu0 %v1275_v33  ;;  %770 = vmatprep.mubr.f32.mxu1 %v1275_v33  ;;  %v297_v42 = vld [vmem:[%s1239_s11 + $0x30] sm:$0xff]  ;;  %v344_v45 = vld [vmem:[%s1239_s11 + $0x1a8] sm:$0xff]  ;;  %v311_v48 = vld [vmem:[%s1239_s11 + $0xa0] sm:$0xff] }
  0x8e   : > { %711 = vmatpush3.xpose.msra.mxu0 %v303_v14  ;;  %v329_v43 = vld [vmem:[%s1239_s11 + $0x130] sm:$0xff]  ;;  %v296_v46 = vld [vmem:[%s1239_s11 + $0x28] sm:$0xff]  ;;  %v343_v49 = vld [vmem:[%s1239_s11 + $0x1a0] sm:$0xff] }
  0x8f   : > { %745 = vmatpush3.xpose.msra.mxu1 %v335_v15  ;;  %712 = vmatprep.subr.mxu0 %v318_v16  ;;  %v328_v47 = vld [vmem:[%s1239_s11 + $0x128] sm:$0xff]  ;;  %v295_v50 = vld [vmem:[%s1239_s11 + $0x20] sm:$0xff]  ;;  %v310_v52 = vld [vmem:[%s1239_s11 + $0x98] sm:$0xff] }
  0x90   : > { %746 = vmatprep.subr.mxu1 %v350_v17  ;;  %v327_v51 = vld [vmem:[%s1239_s11 + $0x120] sm:$0xff]  ;;  %v342_v53 = vld [vmem:[%s1239_s11 + $0x198] sm:$0xff]  ;;  %v309_v56 = vld [vmem:[%s1239_s11 + $0x90] sm:$0xff] }
  0x91   : > { %v294_v54 = vld [vmem:[%s1239_s11 + $0x18] sm:$0xff]  ;;  %v341_v57 = vld [vmem:[%s1239_s11 + $0x190] sm:$0xff]  ;;  %v308_v60 = vld [vmem:[%s1239_s11 + $0x88] sm:$0xff] }
  0x92   : > { %713 = vmatpush3.xpose.msra.mxu0 %v302_v18  ;;  %v326_v55 = vld [vmem:[%s1239_s11 + $0x118] sm:$0xff]  ;;  %v293_v58 = vld [vmem:[%s1239_s11 + $0x10] sm:$0xff]  ;;  %v340_v61 = vld [vmem:[%s1239_s11 + $0x188] sm:$0xff] }
  0x93   : > { %747 = vmatpush3.xpose.msra.mxu1 %v334_v19  ;;  %714 = vmatprep.subr.mxu0 %v317_v20  ;;  %v325_v59 = vld [vmem:[%s1239_s11 + $0x110] sm:$0xff]  ;;  %v292_v62 = vld [vmem:[%s1239_s11 + $0x8] sm:$0xff]  ;;  %v307_v0 = vld [vmem:[%s1239_s11 + $0x80] sm:$0xff] }
  0x94   : > { %748 = vmatprep.subr.mxu1 %v349_v21  ;;  %v324_v63 = vld [vmem:[%s1239_s11 + $0x108] sm:$0xff]  ;;  %v339_v1 = vld [vmem:[%s1239_s11 + $0x180] sm:$0xff] }
  0x95   : > { %v291_v2 = vld [vmem:[%s1239_s11] sm:$0xff] }
  0x96   : > { %715 = vmatpush3.xpose.msra.mxu0 %v301_v22  ;;  %v323_v3 = vld [vmem:[%s1239_s11 + $0x100] sm:$0xff] }
  0x97   : > { %749 = vmatpush3.xpose.msra.mxu1 %v333_v23  ;;  %716 = vmatprep.subr.mxu0 %v316_v24  ;;  %v355_v8 = vld [vmem:[%s250_s12] sm:$0xf] }
  0x98   : > { %750 = vmatprep.subr.mxu1 %v348_v25  ;;  %v360_v11 = vrot.slane %v355_v8, %v359_v6  ;;  %v368_v12 = vrot.slane %v355_v8, %v367_v7  ;;  %v364_v13 = vrot.slane %v355_v8, %v363_v9  ;;  %v372_v14 = vrot.slane %v355_v8, %v371_v10 }
  0x9a   : > { %717 = vmatpush3.xpose.msra.mxu0 %v300_v29 }
  0x9b   : > { %751 = vmatpush3.xpose.msra.mxu1 %v332_v30  ;;  %718 = vmatprep.subr.mxu0 %v315_v31 }
  0x9c   : > { %752 = vmatprep.subr.mxu1 %v347_v32 }
  0x9e   : > { %719 = vmatpush3.xpose.msra.mxu0 %v299_v34 }
  0x9f   : > { %753 = vmatpush3.xpose.msra.mxu1 %v331_v35  ;;  %720 = vmatprep.subr.mxu0 %v314_v36 }
  0xa0   : > { %754 = vmatprep.subr.mxu1 %v346_v37 }
  0xa2   : > { %721 = vmatpush3.xpose.msra.mxu0 %v298_v38 }
  0xa3   : > { %755 = vmatpush3.xpose.msra.mxu1 %v330_v39  ;;  %722 = vmatprep.subr.mxu0 %v313_v40 }
  0xa4   : > { %756 = vmatprep.subr.mxu1 %v345_v41 }
  0xa6   : > { %723 = vmatpush3.xpose.msra.mxu0 %v297_v42 }
  0xa7   : > { %757 = vmatpush3.xpose.msra.mxu1 %v329_v43  ;;  %724 = vmatprep.subr.mxu0 %v312_v44 }
  0xa8   : > { %758 = vmatprep.subr.mxu1 %v344_v45 }
  0xaa   : > { %725 = vmatpush3.xpose.msra.mxu0 %v296_v46 }
  0xab   : > { %759 = vmatpush3.xpose.msra.mxu1 %v328_v47  ;;  %726 = vmatprep.subr.mxu0 %v311_v48 }
  0xac   : > { %760 = vmatprep.subr.mxu1 %v343_v49 }
  0xae   : > { %727 = vmatpush3.xpose.msra.mxu0 %v295_v50 }
  0xaf   : > { %761 = vmatpush3.xpose.msra.mxu1 %v327_v51  ;;  %728 = vmatprep.subr.mxu0 %v310_v52 }
  0xb0   : > { %762 = vmatprep.subr.mxu1 %v342_v53 }
  0xb2   : > { %729 = vmatpush3.xpose.msra.mxu0 %v294_v54 }
  0xb3   : > { %763 = vmatpush3.xpose.msra.mxu1 %v326_v55  ;;  %730 = vmatprep.subr.mxu0 %v309_v56 }
  0xb4   : > { %764 = vmatprep.subr.mxu1 %v341_v57 }
  0xb6   : > { %731 = vmatpush3.xpose.msra.mxu0 %v293_v58 }
  0xb7   : > { %765 = vmatpush3.xpose.msra.mxu1 %v325_v59  ;;  %732 = vmatprep.subr.mxu0 %v308_v60 }
  0xb8   : > { %766 = vmatprep.subr.mxu1 %v340_v61 }
  0xba   : > { %733 = vmatpush3.xpose.msra.mxu0 %v292_v62 }
  0xbb   : > { %767 = vmatpush3.xpose.msra.mxu1 %v324_v63  ;;  %734 = vmatprep.subr.mxu0 %v307_v0 }
  0xbc   : > { %768 = vmatprep.subr.mxu1 %v339_v1 }
  0xbe   : > { %735 = vmatpush3.xpose.msra.mxu0 %v291_v2 }
  0xbf   : > { %769 = vmatpush3.xpose.msra.mxu1 %v323_v3 }
  0xc1   : > { %737 = vmatmul.mubr.f32.vlgmr.msra.gmra.mxu0 %v1275_v33 }
  0xc2   : > { %771 = vmatmul.mubr.f32.vlgmr.msra.gmra.mxu1 %v1275_v33 }
 0x181   : > { %v443_v15 = vpop.f32.mrf.mxu0 }
 0x182   : > { %v514_v16 = vpop.f32.mrf.mxu1  ;;  %v444_v17 = vadd.f32 %v443_v15, %v360_v11 }
 0x183   : > { %v515_v18 = vadd.f32 %v514_v16, %v368_v12  ;;  %v445_v19 = vpop.f32.mrf.mxu0 }
 0x184   : > { %v516_v20 = vpop.f32.mrf.mxu1  ;;  %v692_v21 = vmul.f32 -1.442695, %v444_v17  ;;  %v446_v23 = vadd.f32 %v445_v19, %v364_v13 }
 0x185   : > { %v694_v22 = vmul.f32 -1.442695, %v515_v18  ;;  %v517_v24 = vadd.f32 %v516_v20, %v372_v14 }
 0x186   : > { %837 = vpow2.f32 %v692_v21  ;;  %v693_v25 = vmul.f32 -1.442695, %v446_v23 }
 0x187   : > { %v695_v26 = vmul.f32 -1.442695, %v517_v24  ;;  %839 = vpow2.f32 %v694_v22 }
 0x188   : > { %841 = vpow2.f32 %v693_v25 }
 0x189   : > { %843 = vpow2.f32 %v695_v26 }
 0x193   : > { %v838_v27 = vpop.eup %837 }
 0x194   : > { %v840_v28 = vpop.eup %839  ;;  %v531_v29 = vadd.f32 1.0, %v838_v27 }
 0x195   : > { %v842_v30 = vpop.eup %841  ;;  %v533_v31 = vadd.f32 1.0, %v840_v28 }
 0x196   : > { %v844_v32 = vpop.eup %843  ;;  %845 = vrcp.f32 %v531_v29  ;;  %v532_v33 = vadd.f32 1.0, %v842_v30 }
 0x197   : > { %847 = vrcp.f32 %v533_v31  ;;  %v534_v34 = vadd.f32 1.0, %v844_v32 }
 0x198   : > { %849 = vrcp.f32 %v532_v33 }
 0x199   : > { %851 = vrcp.f32 %v534_v34 }
 0x1a3   : > { %v846_v35 = vpop.eup %845 }
 0x1a4   : > { %v848_v36 = vpop.eup %847  ;;  %543 = vst [vmem:[%s279_s13] sm:$0xff] %v846_v35 }
 0x1a5   : > { %v850_v37 = vpop.eup %849  ;;  %545 = vst [vmem:[%s279_s13 + $0x10] sm:$0xff] %v848_v36 }
 0x1a6   : > { %v852_v38 = vpop.eup %851  ;;  %544 = vst [vmem:[%s279_s13 + $0x8] sm:$0xff] %v850_v37 }
 0x1a7   : > { %546 = vst [vmem:[%s279_s13 + $0x18] sm:$0xff] %v852_v38 }
 0x1a8   : > { %970 = shalt.err (!%p967_p8)
}
 0x1a9   : > { %s971_s0 = scalar_lea.hbm %s1321_s30, 512  ;;  %s975_s10 = scalar_lea.hbm %s1368_s4, 1024 }
 0x1aa   : > { %p972_p9 = scmp.ne.s32.totalorder %s1321_s30, %s971_s0  ;;  %p976_p3 = scmp.lt.s32.totalorder %s1321_s30, %s1368_s4 }
 0x1ab   : > { %p977_p0 = scmp.lt.s32.totalorder %s975_s10, %s971_s0 }
 0x1ac   : > { %p973_p10 = pnand %p972_p9, %p1390_p12 }
 0x1ad   : > { %p978_p7 = por %p977_p0, %p976_p3 }
 0x1ae   : > { %p974_p1 = pneg %p973_p10 }
 0x1b0   : > { %p979_p4 = pnand %p978_p7, %p974_p1 }
 0x1b2   : > { %982 = shalt.err (!%p979_p4)
}
 0x1b3   : > { %783 = dma.vmem_to_hbm [thread:$0]  (%p1390_p12), %s1323_s14, 512, %s1321_s30, %s548_s19  }
 0x1b4 PF: > { %s574_s12 = sand.u32 1, %s1017_s15   ;;  %p1391_p6 = scmp.ne.s32.totalorder %s1378_s28, 0 }
 0x1b5   : > { %s575_s6 = scalar_lea.sflag [#allocation4], %s574_s12 }
 0x1b6   : > { %p793_p13 = pnand %p675_p11, %p1391_p6 }
 0x1b8   : > { %p794_p5 = pneg %p793_p13 }
 0x1ba   : > { %1012 = dma.done.wait (%p794_p5), %s575_s6, 512  }
 0x1bb   : > { %1014 = vsyncadd (%p794_p5), %s575_s6, 4294966784  ;;  %p16_p2 = scmp.ge.s32.totalorder %s1088_s21, 4   ;;  %s1392_s15 = smov %s1021_s16 }
 0x1bc   : > { %s1393_s16 = smov %s1025_s17  ;;  %s1394_s17 = smov %s1100_s24 }
 0x1bd   : > { %s1395_s18 = smov %s1088_s21  ;;  %18 = sbr.rel (!%p16_p2) target bundleno = 7 (0x7), region = 99 }
 0x1c2   :  { %580 = vsyncpa [#allocation3], 1 }
 0x1c3   :  { %582 = vsyncpa [#allocation3 + $0x1], 1 }
 0x1c4   :  { %583 = vsyncpa [#allocation6], 1 }
 0x1c5   :  { %584 = vsyncpa [#allocation4], 1 }
 0x1c6   :  { %586 = vsyncpa [#allocation4 + $0x1], 1 }

</bundles_post_ra>
